<compile_context>
chip_gen: v7x
topology: tpu7x:2x2x1
jax: 0.10.0
libtpu: 0.0.40
codegen_flags: <defaults>
</compile_context>

<pallas_src>
import functools

import jax
import jax.numpy as jnp
from jax import lax
from jax.experimental import pallas as pl
from jax.experimental.pallas import tpu as pltpu


def _round_up(x, m):
    return (x + m - 1) // m * m


# ----------------------------------------------------------------------------
# Pallas kernel: one full-K, full-N dot per row tile, bias fused in epilogue
# ----------------------------------------------------------------------------

def _patch_proj_kernel(x_ref, w_ref, b_ref, o_ref):
    o_ref[...] = (
        jnp.dot(x_ref[...], w_ref[...], preferred_element_type=jnp.float32)
        + b_ref[...].astype(jnp.float32)
    ).astype(o_ref.dtype)


def patch_proj(cols, w, b, *, tm=512, out_dtype=None):
    """cols: (M, K), w: (K, N), b: (N,)  ->  (M, N) = cols @ w + b."""
    M, K = cols.shape
    K2, N = w.shape
    assert K == K2 and b.shape == (N,)
    out_dtype = out_dtype or cols.dtype

    # Row-tile size: sublane multiple (8), capped at the problem, and split so
    # any realistic M gives >= 2 "parallel" row tiles (v7x has 2 TensorCores).
    Mp8 = _round_up(M, 8)
    tm = min(tm, Mp8)
    if Mp8 // tm < 2 and Mp8 >= 16:
        tm = _round_up(pl.cdiv(Mp8, 2), 8)
    Mp = _round_up(M, tm)

    # Pad only M (if the tile does not divide it); K/N use full-extent blocks.
    xp = cols if Mp == M else jnp.pad(cols, ((0, Mp - M), (0, 0)))
    b2 = b.reshape(1, N)

    out = pl.pallas_call(
        _patch_proj_kernel,
        grid_spec=pltpu.PrefetchScalarGridSpec(
            num_scalar_prefetch=0,
            grid=(Mp // tm,),
            in_specs=[
                pl.BlockSpec((tm, K), lambda i: (i, 0)),   # streams HBM once
                pl.BlockSpec((K, N), lambda i: (0, 0)),    # VMEM-resident
                pl.BlockSpec((1, N), lambda i: (0, 0)),    # VMEM-resident
            ],
            out_specs=pl.BlockSpec((tm, N), lambda i: (i, 0)),
        ),
        out_shape=jax.ShapeDtypeStruct((Mp, N), out_dtype),
        compiler_params=pltpu.CompilerParams(
            dimension_semantics=("parallel",),
        ),
    )(xp, w, b2)
    return out if Mp == M else out[:M]


# ----------------------------------------------------------------------------
# MelPatchEmbed forward
# ----------------------------------------------------------------------------

def mel_patch_embed(x, w, b, *, patch_size, compute_dtype=None):
    """Matches MelPatchEmbed.forward:
         x = Conv2d(C, D, kernel=stride=P)(x).flatten(2).transpose(1, 2)

    x: (B, C, n_mels, n_frames)   NCHW, like the PyTorch conv input
    w: (C*P*P, D)                 conv weight (D, C, P, P) flattened+transposed
    b: (D,)
    returns (B, num_patches, D), num_patches = (n_mels//P) * (n_frames//P)
    """
    B, C, H, W = x.shape
    P = patch_size
    h, wn = H // P, W // P
    K = C * P * P
    D = w.shape[1]

    # im2col for the non-overlapping PxP conv: plain-JAX layout glue (no
    # FLOPs).  The transpose / optional K zero-pad / optional bf16 cast form a
    # single copy feeding pallas_call.
    # TODO(synk): for very large inputs this copy could be removed entirely by
    # a (1, C, P, W)-strip BlockSpec + in-kernel rearrange (P>=8 only).
    cols = x.reshape(B, C, h, P, wn, P)
    cols = jnp.transpose(cols, (0, 2, 4, 1, 3, 5))          # (B, h, w, C, P, P)
    cols = cols.reshape(B * h * wn, K)

    # Keep loads lane-dense for tiny K (e.g. C=1, P=4 -> K=16): zero-pad the
    # reduction up to the 128-lane width.  Exact (zeros contribute nothing);
    # the small weight is padded once alongside.  Typical P=16, C=1 -> K=256
    # is already aligned and no pad happens.
    Kp = _round_up(K, 128)
    if Kp != K:
        cols = jnp.pad(cols, ((0, 0), (0, Kp - K)))
        w = jnp.pad(w, ((0, Kp - K), (0, 0)))

    if compute_dtype is not None:        # bf16 HBM traffic on v6e / v7x
        cols = cols.astype(compute_dtype)
        w = w.astype(compute_dtype)

    y = patch_proj(cols, w, b, out_dtype=x.dtype)
    return y.reshape(B, h * wn, D)                          # (B, L, D)


# Pure-JAX reference (proves the kernel matches the PyTorch Conv2d semantics).
def mel_patch_embed_reference(x, w, b, *, patch_size):
    D = w.shape[1]
    C = x.shape[1]
    P = patch_size
    w_conv = jnp.transpose(w, (1, 0)).reshape(D, C, P, P)    # (O, I, kh, kw)
    y = lax.conv_general_dilated(
        x, w_conv, window_strides=(P, P), padding="VALID",
        dimension_numbers=("NCHW", "OIHW", "NCHW"),
        precision=lax.Precision.HIGHEST)
    y = y + b.reshape(1, D, 1, 1)
    B, D_, hh, ww = y.shape
    return y.reshape(B, D_, hh * ww).transpose(0, 2, 1)      # flatten(2).T(1,2)


# ----------------------------------------------------------------------------
# Demo
# ----------------------------------------------------------------------------

if __name__ == "__main__":
    # Small shapes consistent with the module; embed_dim lane-aligned so the
    # output stores are unmasked full-width vst.
    B, in_chans = 2, 1
    n_mels, n_frames = 16, 16
    patch_size, embed_dim = 4, 128

    key = jax.random.PRNGKey(0)
    kx, kw, kb = jax.random.split(key, 3)
    x = jax.random.normal(kx, (B, in_chans, n_mels, n_frames), jnp.float32)
    w = jax.random.normal(
        kw, (in_chans * patch_size * patch_size, embed_dim), jnp.float32) * 0.02
    b = jax.random.normal(kb, (embed_dim,), jnp.float32) * 0.02

    fwd = jax.jit(functools.partial(mel_patch_embed, patch_size=patch_size))
    out = fwd(x, w, b)
    jax.block_until_ready(out)

    num_patches = (n_mels // patch_size) * (n_frames // patch_size)
    assert out.shape == (B, num_patches, embed_dim), out.shape

    ref = mel_patch_embed_reference(x, w, b, patch_size=patch_size)
    max_err = float(jnp.max(jnp.abs(out - ref)))
    assert max_err < 5e-3, f"mismatch vs conv reference: {max_err}"
    assert bool(jnp.all(jnp.isfinite(out)))
    # TODO(synk): PyTorch's default Conv2d fan-in init is not replicated here;
    # weights are deterministic normal(0, 0.02) since init is not part of forward.
    print("KERNEL_OK")
</pallas_src>

<mosaic_0001>
module attributes {stable_mosaic.version = 11 : i64} {
  func.func @_patch_proj_kernel(%arg0: i32, %arg1: memref<16x128xf32, #tpu.memory_space<vmem>>, %arg2: memref<128x128xf32, #tpu.memory_space<vmem>>, %arg3: memref<1x128xf32, #tpu.memory_space<vmem>>, %arg4: memref<16x128xf32, #tpu.memory_space<vmem>>) attributes {dimension_semantics = [#tpu.dimension_semantics<parallel>], iteration_bounds = array<i64: 2>, scalar_prefetch = 0 : i64, scratch_operands = 0 : i64, tpu.core_type = #tpu.core_type<tc>, window_params = [{transform_indices = @transform_0, window_bounds = array<i64: 16, 128>}, {pipeline_mode = #tpu.pipeline_mode<synchronous>, transform_indices = @transform_1, window_bounds = array<i64: 128, 128>}, {pipeline_mode = #tpu.pipeline_mode<synchronous>, transform_indices = @transform_2, window_bounds = array<i64: 1, 128>}, {transform_indices = @transform_3, window_bounds = array<i64: 16, 128>}]} {
    %c0 = arith.constant 0 : index
    %c0_0 = arith.constant 0 : index
    %0 = vector.load %arg1[%c0, %c0_0] : memref<16x128xf32, #tpu.memory_space<vmem>>, vector<16x128xf32>
    %c0_1 = arith.constant 0 : index
    %c0_2 = arith.constant 0 : index
    %1 = vector.load %arg2[%c0_1, %c0_2] : memref<128x128xf32, #tpu.memory_space<vmem>>, vector<128x128xf32>
    %cst = arith.constant dense<0.000000e+00> : vector<16x128xf32>
    %2 = tpu.matmul %0, %1, %cst {dimension_numbers = #tpu.dot_dimension_numbers<[1], [0], [0], [1], [0, 0, 1, 1], [], []>} : vector<16x128xf32>, vector<128x128xf32>, vector<16x128xf32> -> vector<16x128xf32>
    %c0_3 = arith.constant 0 : index
    %c0_4 = arith.constant 0 : index
    %3 = vector.load %arg3[%c0_3, %c0_4] : memref<1x128xf32, #tpu.memory_space<vmem>>, vector<1x128xf32>
    %4 = vector.broadcast %3 : vector<1x128xf32> to vector<16x128xf32>
    %5 = arith.addf %2, %4 : vector<16x128xf32>
    %c0_5 = arith.constant 0 : index
    %c0_6 = arith.constant 0 : index
    %6 = vector.load %arg4[%c0_5, %c0_6] : memref<16x128xf32, #tpu.memory_space<vmem>>, vector<16x128xf32>
    tpu.vector_store %arg4[%c0_5, %c0_6], %5 {strides = array<i32>} : memref<16x128xf32, #tpu.memory_space<vmem>>, vector<16x128xf32>,
    return
  }
  func.func @transform_0(%arg0: i32) -> (i32, i32) {
    %c0_i32 = arith.constant 0 : i32
    %c0_i32_0 = arith.constant 0 : i32
    return %arg0, %c0_i32 : i32, i32
  }
  func.func @transform_1(%arg0: i32) -> (i32, i32) {
    %c0_i32 = arith.constant 0 : i32
    %c0_i32_0 = arith.constant 0 : i32
    %c0_i32_1 = arith.constant 0 : i32
    return %c0_i32, %c0_i32_0 : i32, i32
  }
  func.func @transform_2(%arg0: i32) -> (i32, i32) {
    %c0_i32 = arith.constant 0 : i32
    %c0_i32_0 = arith.constant 0 : i32
    %c0_i32_1 = arith.constant 0 : i32
    return %c0_i32, %c0_i32_0 : i32, i32
  }
  func.func @transform_3(%arg0: i32) -> (i32, i32) {
    %c0_i32 = arith.constant 0 : i32
    %c0_i32_0 = arith.constant 0 : i32
    return %arg0, %c0_i32 : i32, i32
  }
}

</mosaic_0001>

<bundles_post_ra>
// kernel: mel_patch_embed.1
= control target key start
LH: loop header
LB: loop body
LE: loop exit
PB: predicated region body
PF: predicated region fallthrough
CT: control target
= control target key end

     0   :  { %8 = vsyncpa [#allocation3], 0  ;;  %s730_s0 = inlined_call_operand.vmem [shape: f32[32,128], index: 0, kind: input, shape index: {}]   ;;  %s731_s1 = inlined_call_operand.vmem [shape: f32[128,128], index: 1, kind: input, shape index: {}]   ;;  %s732_s2 = inlined_call_operand.vmem [shape: f32[1,128], index: 2, kind: input, shape index: {}]   ;;  %s733_s3 = inlined_call_operand.hbm [shape: f32[32,128], index: 3, kind: output, shape index: {}]  }
   0x1   :  { %10 = vsyncpa [#allocation3 + $0x1], 0  ;;  %s577_s12 = smov 0   ;;  %s579_s13 = smov 0  }
   0x2   :  { %s581_s14 = smov 0   ;;  %s583_s15 = smov 0  }
   0x3 LB: > { %s598_s16 = sadd.s32 4294967295, %s552_s15   ;;  %s350_s17 = sadd.s32 4294967294, %s552_s15   ;;  %s552_s15 = sphi %s583_s15, %s739_s15   ;;  %s548_s14 = sphi %s581_s14, %s738_s14   ;;  %s544_s13 = sphi %s579_s13, %s737_s13   ;;  %s540_s12 = sphi %s577_s12, %s736_s12  }
   0x4   : > { %s602_s18 = sadd.s32 1, %s552_s15   ;;  %s91_s19 = sadd.s32 1, %s548_s14 }
   0x5   : > { %s88_s20 = ssub.s32 %s552_s15, %s602_s18  ;;  %p101_p0 = scmp.ne.s32.totalorder %s548_s14, %s544_s13 }
   0x6   : > { %p89_p1 = scmp.eq.s32.totalorder %s88_s20, 0  ;;  %p102_p2 = scmp.eq.s32.totalorder %s598_s16, 1 }
   0x7   : > { %p107_p3 = scmp.ne.s32.totalorder %s544_s13, %s540_s12  ;;  %p108_p4 = scmp.eq.s32.totalorder %s350_s17, 1 }
   0x8   : > { %s613_s21 = scalar_select %p89_p1, %s548_s14, %s91_s19  }
   0x9   : > { %p615_p5 = por %p102_p2, %p101_p0  ;;  %p619_p6 = por %p108_p4, %p107_p3 }
   0xa   : > { %p353_p7 = scmp.ge.s32.totalorder %s552_s15, 1  ;;  %p141_p8 = scmp.lt.s32.totalorder %s552_s15, 3 }
   0xc   : > { %p142_p9 = pnand %p353_p7, %p141_p8 }
   0xd   : > { %v174_v0 = vld [vmem:[%s731_s1] sm:$0xff] (!%p142_p9)  ;;  %v175_v1 = vld [vmem:[%s731_s1 + $0x8] sm:$0xff] (!%p142_p9)  ;;  %v176_v2 = vld [vmem:[%s731_s1 + $0x10] sm:$0xff] (!%p142_p9)  ;;  %s355_s30 = sshll.u32 (!%p142_p9), %s598_s16, 1  ;;  %s162_s25 = sand.u32 (!%p142_p9), 1, %s544_s13  }
   0xe   : > { %145 = sbr.rel (%p142_p9) target bundleno = 278 (0x116), region = 32  ;;  %v417_v3 = vpack.c.bf16 (!%p142_p9), %v175_v1, %v174_v0  ;;  %v177_v4 = vld [vmem:[%s731_s1 + $0x18] sm:$0xff] (!%p142_p9)  ;;  %p166_p10 = scmp.lt.s32.totalorder (!%p142_p9), %s355_s30, 3  ;;  %v178_v6 = vld [vmem:[%s731_s1 + $0x20] sm:$0xff] (!%p142_p9)  ;;  %v179_v7 = vld [vmem:[%s731_s1 + $0x28] sm:$0xff] (!%p142_p9) }
   0xf   : > { %v421_v5 = vpack.c.bf16 (!%p142_p9), %v177_v4, %v176_v2  ;;  %v425_v8 = vpack.c.bf16 (!%p142_p9), %v179_v7, %v178_v6  ;;  %v180_v9 = vld [vmem:[%s731_s1 + $0x30] sm:$0xff] (!%p142_p9)  ;;  %v181_v10 = vld [vmem:[%s731_s1 + $0x38] sm:$0xff] (!%p142_p9)  ;;  %v182_v13 = vld [vmem:[%s731_s1 + $0x40] sm:$0xff] (!%p142_p9)  ;;  %s354_s27 = sshll.u32 (!%p142_p9), %s162_s25, 4  ;;  %s363_s5 = sshll.u32 (!%p142_p9), %s598_s16, 8 }
  0x10   : > { %418 = vmatprep.subr.bf16.mxu0 (!%p142_p9), %v417_v3  ;;  %v429_v12 = vpack.c.bf16 (!%p142_p9), %v181_v10, %v180_v9  ;;  %v183_v14 = vld [vmem:[%s731_s1 + $0x48] sm:$0xff] (!%p142_p9)  ;;  %v184_v16 = vld [vmem:[%s731_s1 + $0x50] sm:$0xff] (!%p142_p9)  ;;  %v185_v17 = vld [vmem:[%s731_s1 + $0x58] sm:$0xff] (!%p142_p9)  ;;  %s687_s7 = scalar_lea.hbm (!%p142_p9), %s733_s3, %s363_s5  ;;  %s689_s8 = scalar_lea.sflag (!%p142_p9), [#allocation3], %s162_s25 }
  0x11   : > { %420 = vmatpush3.bf16.msra.mxu0 (!%p142_p9), %v417_v3  ;;  %v433_v15 = vpack.c.bf16 (!%p142_p9), %v183_v14, %v182_v13  ;;  %v437_v18 = vpack.c.bf16 (!%p142_p9), %v185_v17, %v184_v16  ;;  %v186_v19 = vld [vmem:[%s731_s1 + $0x60] sm:$0xff] (!%p142_p9)  ;;  %v187_v20 = vld [vmem:[%s731_s1 + $0x68] sm:$0xff] (!%p142_p9)  ;;  %v188_v22 = vld [vmem:[%s731_s1 + $0x70] sm:$0xff] (!%p142_p9)  ;;  %s554_s16 = smov (!%p142_p9), [#allocation2]  }
  0x12   : > { %422 = vmatprep.subr.bf16.mxu0 (!%p142_p9), %v421_v5  ;;  %v441_v21 = vpack.c.bf16 (!%p142_p9), %v187_v20, %v186_v19  ;;  %v189_v23 = vld [vmem:[%s731_s1 + $0x78] sm:$0xff] (!%p142_p9)  ;;  %v357_v26 = vld [vmem:[%s732_s2] ss:$0 sm:$0xff] (!%p142_p9) }
  0x13   : > { %v445_v24 = vpack.c.bf16 (!%p142_p9), %v189_v23, %v188_v22 }
  0x15   : > { %s741_s30 = smov (!%p166_p10, %s355_s30), 3  ;;  %424 = vmatpush3.bf16.msra.mxu0 %v421_v5 }
  0x16   : > { %s356_s10 = sshll.u32 %s741_s30, 3  ;;  %426 = vmatprep.subr.bf16.mxu0 %v425_v8  ;;  %s164_s30 = scalar_lea.vmem [#allocation2], %s354_s27 }
  0x17   : > { %s169_s26 = scalar_lea.vmem %s730_s0, %s356_s10  ;;  %s288_s4 = sshll.u32 %s164_s30, 4  ;;  %s682_s4 = int_to_ptr.vmem [resolvable:$true] %s288_s4 }
  0x18   : > { %v172_v11 = vld [vmem:[%s169_s26] sm:$0xff]  ;;  %v173_v25 = vld [vmem:[%s169_s26 + $0x8] sm:$0xff]  ;;  %s490_s9 = scalar_lea.vmem %s682_s4, 256  ;;  %s494_s10 = sshll.u32 %s554_s16, 4  ;;  %s495_s10 = int_to_ptr.vmem [resolvable:$false] %s494_s10 }
  0x19   : > { %414 = vmatprep.mubr.f32.mxu0 %v172_v11  ;;  %428 = vmatpush3.bf16.msra.mxu0 %v425_v8  ;;  %p491_p11 = scmp.ne.s32.totalorder %s682_s4, %s490_s9  ;;  %s496_s11 = scalar_lea.vmem %s495_s10, 512 }
  0x1a   : > { %430 = vmatprep.subr.bf16.mxu0 %v429_v12  ;;  %p497_p0 = scmp.lt.s32.totalorder %s682_s4, %s495_s10  ;;  %p498_p1 = scmp.lt.s32.totalorder %s496_s11, %s490_s9 }
  0x1b   : > { %p492_p12 = pnand %p491_p11, %p615_p5 }
  0x1c   : > { %p499_p2 = por %p498_p1, %p497_p0 }
  0x1d   : > { %432 = vmatpush3.bf16.msra.mxu0 %v429_v12  ;;  %p493_p13 = pneg %p492_p12 }
  0x1e   : > { %434 = vmatprep.subr.bf16.mxu0 %v433_v15 }
  0x1f   : > { %p500_p3 = pnand %p499_p2, %p493_p13 }
  0x21   : > { %436 = vmatpush3.bf16.msra.mxu0 %v433_v15 }
  0x22   : > { %438 = vmatprep.subr.bf16.mxu0 %v437_v18 }
  0x25   : > { %440 = vmatpush3.bf16.msra.mxu0 %v437_v18 }
  0x26   : > { %442 = vmatprep.subr.bf16.mxu0 %v441_v21 }
  0x29   : > { %444 = vmatpush3.bf16.msra.mxu0 %v441_v21 }
  0x2a   : > { %446 = vmatprep.subr.bf16.mxu0 %v445_v24 }
  0x2d   : > { %448 = vmatpush3.bf16.msra.mxu0 %v445_v24 }
  0x30   : > { %415 = vmatmul.mubr.f32.vlgmr.msra.gmra.mrb[0].mxu0 %v173_v25 }
 0x103   : > { %v416_v27 = vpop.f32.mrb[0].mxu0 }
 0x104   : > { %v269_v28 = vadd.f32 %v416_v27, %v357_v26  ;;  %v263_v29 = vpop.f32.mrb[1].mxu0 }
 0x105   : > { %v264_v30 = vadd.f32 %v357_v26, %v263_v29 }
 0x106   : > { %273 = vst [vmem:[%s164_s30 + $0x8] sm:$0xff] %v269_v28 }
 0x107   : > { %272 = vst [vmem:[%s164_s30] sm:$0xff] %v264_v30 }
 0x108   : > { %503 = shalt.err (!%p500_p3)
}
 0x109   : > { %s504_s17 = scalar_lea.hbm %s687_s7, 256  ;;  %s508_s24 = scalar_lea.hbm %s733_s3, 512 }
 0x10a   : > { %p505_p4 = scmp.ne.s32.totalorder %s687_s7, %s504_s17  ;;  %p509_p9 = scmp.lt.u32.totalorder %s687_s7, %s733_s3 }
 0x10b   : > { %p510_p10 = scmp.lt.u32.totalorder %s508_s24, %s504_s17  ;;  %p512_p12 = scmp.lt.u32.totalorder %s504_s17, %s687_s7 }
 0x10c   : > { %p506_p7 = pnand %p505_p4, %p615_p5 }
 0x10d   : > { %p511_p11 = por %p510_p10, %p509_p9 }
 0x10e   : > { %p507_p8 = pneg %p506_p7 }
 0x10f   : > { %p513_p13 = por %p512_p12, %p511_p11 }
 0x111   : > { %p514_p0 = pnand %p513_p13, %p507_p8 }
 0x113   : > { %517 = shalt.err (!%p514_p0)
}
 0x114   : > { %s555_s28 = smov 128   ;;  %s556_s29 = smov 8  }
 0x115   : > { %449 = dma.vmem_to_hbm [thread:$0]  (%p615_p5), %s682_s4, 256, %s687_s7, %s689_s8, %s555_s28, %s555_s28, %s556_s29  }
 0x116 PF: > { %p455_p1 = scmp.ge.s32.totalorder %s552_s15, 2  ;;  %s303_s30 = sand.u32 1, %s540_s12  }
 0x117   : > { %s304_s5 = scalar_lea.sflag [#allocation3], %s303_s30 }
 0x118   : > { %p452_p2 = pnand %p455_p1, %p619_p6 }
 0x11a   : > { %535 = dma.done.wait (!%p452_p2), %s304_s5, 256  }
 0x11b   : > { %537 = vsyncadd (!%p452_p2), %s304_s5, 4294967040  ;;  %p13_p3 = scmp.ge.s32.totalorder %s602_s18, 4   ;;  %s736_s12 = smov %s544_s13 }
 0x11c   : > { %s737_s13 = smov %s548_s14  ;;  %s738_s14 = smov %s613_s21 }
 0x11d   : > { %s739_s15 = smov %s602_s18  ;;  %15 = sbr.rel (!%p13_p3) target bundleno = 3 (0x3), region = 67 }
 0x124   :  { %309 = vsyncpa [#allocation3], 1 }
 0x125   :  { %311 = vsyncpa [#allocation3 + $0x1], 1 }

</bundles_post_ra>
